<compile_context>
chip_gen: v5e
topology: v5e:2x2
jax: 0.10.0
libtpu: 0.0.40
codegen_flags: <defaults>
</compile_context>

<pallas_src>
import functools

import jax
import jax.numpy as jnp
from jax import lax
from jax.experimental import pallas as pl
from jax.experimental.pallas import tpu as pltpu


def rnn_classify_kernel(tok_ref, slab_ref, bias_ref, out_ref, *,
                        s, bp, vp, dp, cp):
    """Fused embedding + tanh RNN + last-hidden Linear head.

    tok_ref : (S, Bp)            int32  time-major tokens (padded batch)
    slab_ref: (Vp + 3*Dp, W)     bf16   [emb ; W_ih^T ; W_hh^T ; W_c^T] rows
    bias_ref: (8, W)             f32    row 0 = b_ih + b_hh, row 1 = b_c
    out_ref : (Bp, Cp)           f32    padded logits
    """
    # --- Static slices of the single parameter slab (zero-cost views). ---
    emb = slab_ref[0:vp, 0:dp]                          # (Vp, Dp) bf16
    wih = slab_ref[vp:vp + dp, 0:dp]                    # (Dp, Dp) bf16
    whh = slab_ref[vp + dp:vp + 2 * dp, 0:dp]           # (Dp, Dp) bf16
    wc = slab_ref[vp + 2 * dp:vp + 3 * dp, 0:cp]        # (Dp, Cp) bf16
    bias_all = bias_ref[...]                            # (8, W)   f32
    bias = bias_all[0:1, 0:dp]                          # (1, Dp)
    bc = bias_all[1:2, 0:cp]                            # (1, Cp)

    # --- Embedding lookup as a one-hot matmul: exact gather on the MXU. ---
    tok = tok_ref[...]                                  # (S, Bp) int32
    onehot = (lax.broadcasted_iota(jnp.int32, (s, bp, vp), 2)
              == tok[:, :, None]).astype(jnp.bfloat16)  # (S, Bp, Vp)
    onehot = onehot.reshape(s * bp, vp)                 # layout-preserving
    x = jnp.dot(onehot, emb,
                preferred_element_type=jnp.float32)     # (S*Bp, Dp) f32
    x = x.astype(jnp.bfloat16)                          # exact (selects bf16 rows)

    # --- Input projection for all timesteps, hoisted out of the recurrence. ---
    xp = jnp.dot(x, wih, preferred_element_type=jnp.float32) + bias  # f32

    # --- Serial recurrence: h lives in vregs, fully unrolled (S static). ---
    h = jnp.zeros((bp, dp), jnp.float32)
    for t in range(s):
        pre = xp[t * bp:(t + 1) * bp, :] + jnp.dot(
            h.astype(jnp.bfloat16), whh, preferred_element_type=jnp.float32)
        h = jnp.tanh(pre)

    logits = jnp.dot(h.astype(jnp.bfloat16), wc,
                     preferred_element_type=jnp.float32) + bc
    out_ref[...] = logits.astype(out_ref.dtype)


def _round_up(x, m):
    return (x + m - 1) // m * m


def make_forward(params):
    """Pads / packs params once and returns a jitted forward(x0) -> logits."""
    emb = params["embedding"]
    v1, d = emb.shape
    c = params["w_c"].shape[0]

    v_pad = _round_up(max(v1, 128), 128)   # lane/contraction dim of one-hot
    d_pad = _round_up(max(d, 128), 128)    # hidden dim, lane-dense
    c_pad = _round_up(max(c, 128), 128)    # class dim, lane-dense output store
    w = max(d_pad, c_pad)

    # Single bf16 parameter slab: [emb ; W_ih^T ; W_hh^T ; W_c^T].
    slab = jnp.zeros((v_pad + 3 * d_pad, w), jnp.bfloat16)
    slab = slab.at[:v1, :d].set(emb.astype(jnp.bfloat16))
    slab = slab.at[v_pad:v_pad + d, :d].set(
        params["w_ih"].T.astype(jnp.bfloat16))
    slab = slab.at[v_pad + d_pad:v_pad + d_pad + d, :d].set(
        params["w_hh"].T.astype(jnp.bfloat16))
    slab = slab.at[v_pad + 2 * d_pad:v_pad + 2 * d_pad + d, :c].set(
        params["w_c"].T.astype(jnp.bfloat16))

    # Small f32 bias block: row 0 = b_ih + b_hh, row 1 = b_c.
    biases = jnp.zeros((8, w), jnp.float32)
    biases = biases.at[0, :d].set(
        (params["b_ih"] + params["b_hh"]).astype(jnp.float32))
    biases = biases.at[1, :c].set(params["b_c"].astype(jnp.float32))

    vmem = pl.BlockSpec(memory_space=pltpu.MemorySpace.VMEM)

    @jax.jit
    def forward(x0):
        bsz, seq = x0.shape
        bp = _round_up(max(bsz, 8), 8)                   # >= 8 sublanes
        tok = x0.astype(jnp.int32).T                     # (S, B) time-major
        if bp != bsz:
            tok = jnp.pad(tok, ((0, 0), (0, bp - bsz)))  # pad batch (token 0)

        flops = 2 * (seq * bp * v_pad * d_pad            # embedding one-hot
                     + seq * bp * d_pad * d_pad          # input projection
                     + seq * bp * d_pad * d_pad          # recurrence
                     + bp * d_pad * c_pad)               # classifier head
        bytes_accessed = (tok.size * 4 + slab.size * 2 + biases.size * 4
                          + bp * c_pad * 4)
        ce = pl.CostEstimate(flops=flops,
                             transcendentals=seq * bp * d_pad,
                             bytes_accessed=bytes_accessed)

        kernel = functools.partial(rnn_classify_kernel, s=seq, bp=bp,
                                   vp=v_pad, dp=d_pad, cp=c_pad)
        out = pl.pallas_call(
            kernel,
            out_shape=jax.ShapeDtypeStruct((bp, c_pad), jnp.float32),
            in_specs=[vmem] * 3,
            out_specs=vmem,
            cost_estimate=ce,
        )(tok, slab, biases)
        return out[:bsz, :c]

    return forward


def reference_forward(x0, params):
    """Pure-JAX f32 reference of TorchModel.forward(x0) (no labels)."""
    emb = params["embedding"]
    x = emb[x0]                                          # (B, S, D)
    wih_t = params["w_ih"].T
    whh_t = params["w_hh"].T
    bias = params["b_ih"] + params["b_hh"]

    def step(h, x_t):
        h = jnp.tanh(jnp.dot(x_t, wih_t, precision=lax.Precision.HIGHEST)
                     + jnp.dot(h, whh_t, precision=lax.Precision.HIGHEST)
                     + bias)
        return h, None

    h0 = jnp.zeros((x0.shape[0], emb.shape[1]), jnp.float32)
    h, _ = lax.scan(step, h0, jnp.transpose(x, (1, 0, 2)))
    return (jnp.dot(h, params["w_c"].T, precision=lax.Precision.HIGHEST)
            + params["b_c"])


def init_params(key, vocab_size, vector_dim, sentence_length):
    ks = jax.random.split(key, 7)
    D, C = vector_dim, sentence_length
    scale = 1.0 / jnp.sqrt(D)
    return {
        "embedding": jax.random.normal(ks[0], (vocab_size + 1, D),
                                       jnp.float32),
        "w_ih": jax.random.uniform(ks[1], (D, D), jnp.float32, -scale, scale),
        "w_hh": jax.random.uniform(ks[2], (D, D), jnp.float32, -scale, scale),
        "b_ih": jax.random.uniform(ks[3], (D,), jnp.float32, -scale, scale),
        "b_hh": jax.random.uniform(ks[4], (D,), jnp.float32, -scale, scale),
        "w_c": jax.random.uniform(ks[5], (C, D), jnp.float32, -scale, scale),
        "b_c": jax.random.uniform(ks[6], (C,), jnp.float32, -scale, scale),
    }


if __name__ == "__main__":
    # Shapes consistent with the module: vector_dim=32, sentence_length=8
    # (seq len == num classes), vocab=26 letters, batch=4.
    vector_dim = 32
    sentence_length = 8
    vocab_size = 26
    batch = 4

    key = jax.random.PRNGKey(0)
    k_params, k_tokens = jax.random.split(key)
    params = init_params(k_params, vocab_size, vector_dim, sentence_length)

    x0 = jax.random.randint(k_tokens, (batch, sentence_length), 0,
                            vocab_size + 1, dtype=jnp.int32)

    forward = make_forward(params)
    y_pred = jax.block_until_ready(forward(x0))
    assert y_pred.shape == (batch, sentence_length)
    assert y_pred.dtype == jnp.float32

    # Sanity check against a pure-JAX f32 reference (loose tol: bf16 weights
    # on the MXU path, f32 accumulation).
    y_ref = jax.block_until_ready(reference_forward(x0, params))
    assert jnp.allclose(y_pred, y_ref, atol=5e-2, rtol=5e-2), (
        float(jnp.max(jnp.abs(y_pred - y_ref))))

    # TODO(synk): CrossEntropyLoss branch (y is not None) not implemented;
    # forward-only inference path reproduced here.
    print("KERNEL_OK")
</pallas_src>

<mosaic_0001>
module attributes {stable_mosaic.version = 11 : i64} {
  func.func @rnn_classify_kernel(%arg0: memref<8x8xi32, #tpu.memory_space<vmem>>, %arg1: memref<512x128xbf16, #tpu.memory_space<vmem>>, %arg2: memref<8x128xf32, #tpu.memory_space<vmem>>, %arg3: memref<8x128xf32, #tpu.memory_space<vmem>>) attributes {dimension_semantics = [], scalar_prefetch = 0 : i64, scratch_operands = 0 : i64, tpu.core_type = #tpu.core_type<tc>} {
    %c0 = arith.constant 0 : index
    %c0_0 = arith.constant 0 : index
    %0 = vector.load %arg1[%c0, %c0_0] : memref<512x128xbf16, #tpu.memory_space<vmem>>, vector<128x128xbf16>
    %c128 = arith.constant 128 : index
    %c0_1 = arith.constant 0 : index
    %1 = vector.load %arg1[%c128, %c0_1] : memref<512x128xbf16, #tpu.memory_space<vmem>>, vector<128x128xbf16>
    %c256 = arith.constant 256 : index
    %c0_2 = arith.constant 0 : index
    %2 = vector.load %arg1[%c256, %c0_2] : memref<512x128xbf16, #tpu.memory_space<vmem>>, vector<128x128xbf16>
    %c384 = arith.constant 384 : index
    %c0_3 = arith.constant 0 : index
    %3 = vector.load %arg1[%c384, %c0_3] : memref<512x128xbf16, #tpu.memory_space<vmem>>, vector<128x128xbf16>
    %c0_4 = arith.constant 0 : index
    %c0_5 = arith.constant 0 : index
    %4 = vector.load %arg2[%c0_4, %c0_5] : memref<8x128xf32, #tpu.memory_space<vmem>>, vector<8x128xf32>
    %5 = vector.extract_strided_slice %4 {offsets = [0, 0], sizes = [1, 128], strides = [1, 1]} : vector<8x128xf32> to vector<1x128xf32>
    %6 = vector.extract_strided_slice %4 {offsets = [1, 0], sizes = [1, 128], strides = [1, 1]} : vector<8x128xf32> to vector<1x128xf32>
    %c0_6 = arith.constant 0 : index
    %c0_7 = arith.constant 0 : index
    %7 = vector.load %arg0[%c0_6, %c0_7] : memref<8x8xi32, #tpu.memory_space<vmem>>, vector<8x8xi32>
    %8 = tpu.iota {dimensions = array<i32: 2>} : vector<8x8x128xi32>
    %9 = vector.shape_cast %7 : vector<8x8xi32> to vector<8x8x1xi32>
    %10 = vector.broadcast %9 : vector<8x8x1xi32> to vector<8x8x128xi32>
    %11 = arith.cmpi eq, %8, %10 : vector<8x8x128xi32>
    %12 = arith.extui %11 : vector<8x8x128xi1> to vector<8x8x128xi32>
    %13 = arith.sitofp %12 : vector<8x8x128xi32> to vector<8x8x128xf32>
    %14 = arith.truncf %13 : vector<8x8x128xf32> to vector<8x8x128xbf16>
    %15 = vector.shape_cast %14 : vector<8x8x128xbf16> to vector<64x128xbf16>
    %cst = arith.constant dense<0.000000e+00> : vector<64x128xf32>
    %16 = tpu.matmul %15, %0, %cst {dimension_numbers = #tpu.dot_dimension_numbers<[1], [0], [0], [1], [0, 0, 1, 1], [], []>} : vector<64x128xbf16>, vector<128x128xbf16>, vector<64x128xf32> -> vector<64x128xf32>
    %17 = arith.truncf %16 : vector<64x128xf32> to vector<64x128xbf16>
    %cst_8 = arith.constant dense<0.000000e+00> : vector<64x128xf32>
    %18 = tpu.matmul %17, %1, %cst_8 {dimension_numbers = #tpu.dot_dimension_numbers<[1], [0], [0], [1], [0, 0, 1, 1], [], []>} : vector<64x128xbf16>, vector<128x128xbf16>, vector<64x128xf32> -> vector<64x128xf32>
    %19 = vector.broadcast %5 : vector<1x128xf32> to vector<64x128xf32>
    %20 = arith.addf %18, %19 : vector<64x128xf32>
    %cst_9 = arith.constant 0.000000e+00 : f32
    %21 = vector.broadcast %cst_9 : f32 to vector<8x128xf32>
    %22 = vector.extract_strided_slice %20 {offsets = [0, 0], sizes = [8, 128], strides = [1, 1]} : vector<64x128xf32> to vector<8x128xf32>
    %23 = arith.truncf %21 : vector<8x128xf32> to vector<8x128xbf16>
    %cst_10 = arith.constant dense<0.000000e+00> : vector<8x128xf32>
    %24 = tpu.matmul %23, %2, %cst_10 {dimension_numbers = #tpu.dot_dimension_numbers<[1], [0], [0], [1], [0, 0, 1, 1], [], []>} : vector<8x128xbf16>, vector<128x128xbf16>, vector<8x128xf32> -> vector<8x128xf32>
    %25 = arith.addf %22, %24 : vector<8x128xf32>
    %26 = math.tanh %25 : vector<8x128xf32>
    %27 = vector.extract_strided_slice %20 {offsets = [8, 0], sizes = [8, 128], strides = [1, 1]} : vector<64x128xf32> to vector<8x128xf32>
    %28 = arith.truncf %26 : vector<8x128xf32> to vector<8x128xbf16>
    %cst_11 = arith.constant dense<0.000000e+00> : vector<8x128xf32>
    %29 = tpu.matmul %28, %2, %cst_11 {dimension_numbers = #tpu.dot_dimension_numbers<[1], [0], [0], [1], [0, 0, 1, 1], [], []>} : vector<8x128xbf16>, vector<128x128xbf16>, vector<8x128xf32> -> vector<8x128xf32>
    %30 = arith.addf %27, %29 : vector<8x128xf32>
    %31 = math.tanh %30 : vector<8x128xf32>
    %32 = vector.extract_strided_slice %20 {offsets = [16, 0], sizes = [8, 128], strides = [1, 1]} : vector<64x128xf32> to vector<8x128xf32>
    %33 = arith.truncf %31 : vector<8x128xf32> to vector<8x128xbf16>
    %cst_12 = arith.constant dense<0.000000e+00> : vector<8x128xf32>
    %34 = tpu.matmul %33, %2, %cst_12 {dimension_numbers = #tpu.dot_dimension_numbers<[1], [0], [0], [1], [0, 0, 1, 1], [], []>} : vector<8x128xbf16>, vector<128x128xbf16>, vector<8x128xf32> -> vector<8x128xf32>
    %35 = arith.addf %32, %34 : vector<8x128xf32>
    %36 = math.tanh %35 : vector<8x128xf32>
    %37 = vector.extract_strided_slice %20 {offsets = [24, 0], sizes = [8, 128], strides = [1, 1]} : vector<64x128xf32> to vector<8x128xf32>
    %38 = arith.truncf %36 : vector<8x128xf32> to vector<8x128xbf16>
    %cst_13 = arith.constant dense<0.000000e+00> : vector<8x128xf32>
    %39 = tpu.matmul %38, %2, %cst_13 {dimension_numbers = #tpu.dot_dimension_numbers<[1], [0], [0], [1], [0, 0, 1, 1], [], []>} : vector<8x128xbf16>, vector<128x128xbf16>, vector<8x128xf32> -> vector<8x128xf32>
    %40 = arith.addf %37, %39 : vector<8x128xf32>
    %41 = math.tanh %40 : vector<8x128xf32>
    %42 = vector.extract_strided_slice %20 {offsets = [32, 0], sizes = [8, 128], strides = [1, 1]} : vector<64x128xf32> to vector<8x128xf32>
    %43 = arith.truncf %41 : vector<8x128xf32> to vector<8x128xbf16>
    %cst_14 = arith.constant dense<0.000000e+00> : vector<8x128xf32>
    %44 = tpu.matmul %43, %2, %cst_14 {dimension_numbers = #tpu.dot_dimension_numbers<[1], [0], [0], [1], [0, 0, 1, 1], [], []>} : vector<8x128xbf16>, vector<128x128xbf16>, vector<8x128xf32> -> vector<8x128xf32>
    %45 = arith.addf %42, %44 : vector<8x128xf32>
    %46 = math.tanh %45 : vector<8x128xf32>
    %47 = vector.extract_strided_slice %20 {offsets = [40, 0], sizes = [8, 128], strides = [1, 1]} : vector<64x128xf32> to vector<8x128xf32>
    %48 = arith.truncf %46 : vector<8x128xf32> to vector<8x128xbf16>
    %cst_15 = arith.constant dense<0.000000e+00> : vector<8x128xf32>
    %49 = tpu.matmul %48, %2, %cst_15 {dimension_numbers = #tpu.dot_dimension_numbers<[1], [0], [0], [1], [0, 0, 1, 1], [], []>} : vector<8x128xbf16>, vector<128x128xbf16>, vector<8x128xf32> -> vector<8x128xf32>
    %50 = arith.addf %47, %49 : vector<8x128xf32>
    %51 = math.tanh %50 : vector<8x128xf32>
    %52 = vector.extract_strided_slice %20 {offsets = [48, 0], sizes = [8, 128], strides = [1, 1]} : vector<64x128xf32> to vector<8x128xf32>
    %53 = arith.truncf %51 : vector<8x128xf32> to vector<8x128xbf16>
    %cst_16 = arith.constant dense<0.000000e+00> : vector<8x128xf32>
    %54 = tpu.matmul %53, %2, %cst_16 {dimension_numbers = #tpu.dot_dimension_numbers<[1], [0], [0], [1], [0, 0, 1, 1], [], []>} : vector<8x128xbf16>, vector<128x128xbf16>, vector<8x128xf32> -> vector<8x128xf32>
    %55 = arith.addf %52, %54 : vector<8x128xf32>
    %56 = math.tanh %55 : vector<8x128xf32>
    %57 = vector.extract_strided_slice %20 {offsets = [56, 0], sizes = [8, 128], strides = [1, 1]} : vector<64x128xf32> to vector<8x128xf32>
    %58 = arith.truncf %56 : vector<8x128xf32> to vector<8x128xbf16>
    %cst_17 = arith.constant dense<0.000000e+00> : vector<8x128xf32>
    %59 = tpu.matmul %58, %2, %cst_17 {dimension_numbers = #tpu.dot_dimension_numbers<[1], [0], [0], [1], [0, 0, 1, 1], [], []>} : vector<8x128xbf16>, vector<128x128xbf16>, vector<8x128xf32> -> vector<8x128xf32>
    %60 = arith.addf %57, %59 : vector<8x128xf32>
    %61 = math.tanh %60 : vector<8x128xf32>
    %62 = arith.truncf %61 : vector<8x128xf32> to vector<8x128xbf16>
    %cst_18 = arith.constant dense<0.000000e+00> : vector<8x128xf32>
    %63 = tpu.matmul %62, %3, %cst_18 {dimension_numbers = #tpu.dot_dimension_numbers<[1], [0], [0], [1], [0, 0, 1, 1], [], []>} : vector<8x128xbf16>, vector<128x128xbf16>, vector<8x128xf32> -> vector<8x128xf32>
    %64 = vector.broadcast %6 : vector<1x128xf32> to vector<8x128xf32>
    %65 = arith.addf %63, %64 : vector<8x128xf32>
    %c0_19 = arith.constant 0 : index
    %c0_20 = arith.constant 0 : index
    %66 = vector.load %arg3[%c0_19, %c0_20] : memref<8x128xf32, #tpu.memory_space<vmem>>, vector<8x128xf32>
    tpu.vector_store %arg3[%c0_19, %c0_20], %65 {strides = array<i32>} : memref<8x128xf32, #tpu.memory_space<vmem>>, vector<8x128xf32>,
    return
  }
}

</mosaic_0001>

<bundles_post_ra>
// kernel: forward.1
= control target key start
LH: loop header
LB: loop body
LE: loop exit
PB: predicated region body
PF: predicated region fallthrough
CT: control target
= control target key end

     0   :  { %8 = vsyncpa [#allocation3], 0  ;;  %s832_s15 = smov [#allocation2]   ;;  %s833_s17 = smov 64   ;;  %s981_s0 = inlined_call_operand.vmem [shape: s32[8,8], index: 0, kind: input, shape index: {}]   ;;  %s982_s1 = inlined_call_operand.hbm [shape: bf16[512,128], index: 1, kind: input, shape index: {}]   ;;  %s983_s2 = inlined_call_operand.vmem [shape: f32[8,128], index: 2, kind: input, shape index: {}]   ;;  %s984_s3 = inlined_call_operand.vmem [shape: f32[8,128], index: 3, kind: output, shape index: {}]  }
   0x1   :  { %s15_s14 = sshll.u32 %s982_s1, 4  ;;  %s17_s16 = sshll.u32 %s832_s15, 4  ;;  %s16_s14 = int_to_ptr.hbm [resolvable:$true] %s15_s14  ;;  %s18_s16 = int_to_ptr.vmem [resolvable:$true] %s17_s16 }
   0x2   :  { %s834_s18 = smov 4  }
   0x3   :  { %23 = dma.hbm_to_vmem [thread:$0]  %s16_s14, 4096, %s18_s16, [#allocation3], %s833_s17, %s833_s17, %s834_s18  }
   0x4   :  { %830 = dma.done.wait [#allocation3], 4096  }
   0x5   :  { %831 = vsyncadd [#allocation3], 4294963200  ;;  %v97_v0 = vlaneseq  ;;  %v96_v2 = vld [vmem:[%s981_s0] sm:$0xff]  ;;  %v757_v3 = vld [vmem:[#allocation2 + $0x38] sm:$0xff]  ;;  %v835_v22 = vmov 0.0  }
   0x6   :  { %v113_v4 = vperm.slane %v96_v2, 2  ;;  %v99_v5 = vperm.slane %v96_v2, 0  ;;  %v127_v6 = vperm.slane %v96_v2, 4  ;;  %259 = vmatpush.bf16.msra.mxu0 %v757_v3  ;;  %v756_v7 = vld [vmem:[#allocation2 + $0x30] sm:$0xff]  ;;  %v755_v8 = vld [vmem:[#allocation2 + $0x28] sm:$0xff]  ;;  %v120_v9 = vperm.slane %v96_v2, 3 }
   0x7   :  { %v101_v1 = vshrl.u32 %v97_v0, 7  ;;  %v106_v10 = vperm.slane %v96_v2, 1  ;;  %v134_v11 = vperm.slane %v96_v2, 5  ;;  %v754_v12 = vld [vmem:[#allocation2 + $0x20] sm:$0xff]  ;;  %v148_v13 = vperm.slane %v96_v2, 7  ;;  %v753_v15 = vld [vmem:[#allocation2 + $0x18] sm:$0xff] }
   0x8   :  { %v141_v14 = vperm.slane %v96_v2, 6  ;;  %v752_v16 = vld [vmem:[#allocation2 + $0x10] sm:$0xff]  ;;  %v751_v17 = vld [vmem:[#allocation2 + $0x8] sm:$0xff]  ;;  %v750_v18 = vld [vmem:[#allocation2] sm:$0xff]  ;;  %v863_v19 = vand.u32 127, %v97_v0 }
   0x9   :  { %788 = vset.pattern.permute.xlu1 %v101_v1  ;;  %787 = vset.pattern.permute.xlu0 %v101_v1  ;;  %v875_v41 = vld [vmem:[#allocation2 + $0xb8] sm:$0xff]  ;;  %v880_v45 = vld [vmem:[#allocation2 + $0xb0] sm:$0xff]  ;;  %v885_v49 = vld [vmem:[#allocation2 + $0xa8] sm:$0xff] }
   0xa   :  { %789 = vset.pattern.permute.xlu2 %v101_v1  ;;  %260 = vmatpush.bf16.msra.mxu0 %v756_v7  ;;  %v765_v44 = vld [vmem:[#allocation2 + $0x78] sm:$0xff]  ;;  %v764_v46 = vld [vmem:[#allocation2 + $0x70] sm:$0xff]  ;;  %v763_v50 = vld [vmem:[#allocation2 + $0x68] sm:$0xff] }
   0xb   :  { %418 = vmatpush.bf16.msra.mxu2 %v875_v41  ;;  %434 = vmatpush.bf16.msra.mxu3 %v875_v41  ;;  %v890_v53 = vld [vmem:[#allocation2 + $0xa0] sm:$0xff]  ;;  %v895_v58 = vld [vmem:[#allocation2 + $0x98] sm:$0xff]  ;;  %v902_v60 = vld [vmem:[#allocation2 + $0x90] sm:$0xff] }
   0xc   :  { %341 = vmatpush.bf16.msra.mxu1 %v765_v44  ;;  %v762_v54 = vld [vmem:[#allocation2 + $0x60] sm:$0xff]  ;;  %v761_v59 = vld [vmem:[#allocation2 + $0x58] sm:$0xff]  ;;  %v909_v1 = vld [vmem:[#allocation2 + $0x88] sm:$0xff] }
   0xd   :  { %v760_v7 = vld [vmem:[#allocation2 + $0x50] sm:$0xff] }
   0xe   :  { %261 = vmatpush.bf16.msra.mxu0 %v755_v8  ;;  %v759_v8 = vld [vmem:[#allocation2 + $0x48] sm:$0xff] }
   0xf   :  { %419 = vmatpush.bf16.msra.mxu2 %v880_v45  ;;  %435 = vmatpush.bf16.msra.mxu3 %v880_v45 }
  0x10   :  { %342 = vmatpush.bf16.msra.mxu1 %v764_v46 }
  0x11   :  { %118 = vperm.xlu1 %788, %v113_v4   ;;  %104 = vperm.xlu0 %787, %v99_v5   ;;  %v914_v4 = vld [vmem:[#allocation2 + $0x80] sm:$0xff] }
  0x12   :  { %132 = vperm.xlu2 %789, %v127_v6   ;;  %262 = vmatpush.bf16.msra.mxu0 %v754_v12  ;;  %v836_v6 = vmov 0  }
  0x13   :  { %420 = vmatpush.bf16.msra.mxu2 %v885_v49  ;;  %436 = vmatpush.bf16.msra.mxu3 %v885_v49 }
  0x14   :  { %343 = vmatpush.bf16.msra.mxu1 %v763_v50 }
  0x16   :  { %263 = vmatpush.bf16.msra.mxu0 %v753_v15 }
  0x17   :  { %421 = vmatpush.bf16.msra.mxu2 %v890_v53  ;;  %437 = vmatpush.bf16.msra.mxu3 %v890_v53 }
  0x18   :  { %344 = vmatpush.bf16.msra.mxu1 %v762_v54 }
  0x19   :  { %125 = vperm.xlu1 %788, %v120_v9   ;;  %111 = vperm.xlu0 %787, %v106_v10   ;;  %v758_v9 = vld [vmem:[#allocation2 + $0x40] sm:$0xff] }
  0x1a   :  { %139 = vperm.xlu2 %789, %v134_v11   ;;  %264 = vmatpush.bf16.msra.mxu0 %v752_v16 }
  0x1b   :  { %422 = vmatpush.bf16.msra.mxu2 %v895_v58  ;;  %438 = vmatpush.bf16.msra.mxu3 %v895_v58 }
  0x1c   :  { %345 = vmatpush.bf16.msra.mxu1 %v761_v59 }
  0x1e   :  { %265 = vmatpush.bf16.msra.mxu0 %v751_v17 }
  0x1f   :  { %423 = vmatpush.bf16.msra.mxu2 %v902_v60  ;;  %439 = vmatpush.bf16.msra.mxu3 %v902_v60 }
  0x20   :  { %346 = vmatpush.bf16.msra.mxu1 %v760_v7  ;;  %v779_v7 = vld [vmem:[#allocation2 + $0xe8] sm:$0xff] }
  0x21   :  { %153 = vperm.xlu1 %788, %v148_v13   ;;  %146 = vperm.xlu0 %787, %v141_v14  }
  0x22   :  { %266 = vmatpush.bf16.msra.mxu0 %v750_v18 }
  0x23   :  { %424 = vmatpush.bf16.msra.mxu2 %v909_v1  ;;  %440 = vmatpush.bf16.msra.mxu3 %v909_v1 }
  0x24   :  { %347 = vmatpush.bf16.msra.mxu1 %v759_v8  ;;  %v778_v8 = vld [vmem:[#allocation2 + $0xe0] sm:$0xff] }
  0x26   :  { %482 = vmatpush.bf16.msrb.mxu0 %v875_v41 }
  0x27   :  { %425 = vmatpush.bf16.msra.mxu2 %v914_v4  ;;  %441 = vmatpush.bf16.msra.mxu3 %v914_v4 }
  0x28   :  { %348 = vmatpush.bf16.msra.mxu1 %v758_v9  ;;  %v777_v9 = vld [vmem:[#allocation2 + $0xd8] sm:$0xff] }
  0x2a   :  { %483 = vmatpush.bf16.msrb.mxu0 %v880_v45  ;;  %426 = vmatmul.bf16.vlgmr.msra.gmra.mxu2 %v836_v6  ;;  %v780_v6 = vld [vmem:[#allocation2 + $0xf0] sm:$0xff] }
  0x2b   :  { %450 = vmatpush.bf16.msrb.mxu2 %v875_v41  ;;  %466 = vmatpush.bf16.msrb.mxu3 %v875_v41 }
  0x2c   :  { %498 = vmatpush.bf16.msrb.mxu1 %v875_v41 }
  0x2e   :  { %484 = vmatpush.bf16.msrb.mxu0 %v885_v49 }
  0x2f   :  { %451 = vmatpush.bf16.msrb.mxu2 %v880_v45  ;;  %467 = vmatpush.bf16.msrb.mxu3 %v880_v45 }
  0x30   :  { %499 = vmatpush.bf16.msrb.mxu1 %v880_v45 }
  0x32   :  { %485 = vmatpush.bf16.msrb.mxu0 %v890_v53 }
  0x33   :  { %452 = vmatpush.bf16.msrb.mxu2 %v885_v49  ;;  %468 = vmatpush.bf16.msrb.mxu3 %v885_v49 }
  0x34   :  { %500 = vmatpush.bf16.msrb.mxu1 %v885_v49 }
  0x36   :  { %486 = vmatpush.bf16.msrb.mxu0 %v895_v58 }
  0x37   :  { %453 = vmatpush.bf16.msrb.mxu2 %v890_v53  ;;  %469 = vmatpush.bf16.msrb.mxu3 %v890_v53 }
  0x38   :  { %501 = vmatpush.bf16.msrb.mxu1 %v890_v53 }
  0x3a   :  { %487 = vmatpush.bf16.msrb.mxu0 %v902_v60 }
  0x3b   :  { %454 = vmatpush.bf16.msrb.mxu2 %v895_v58  ;;  %470 = vmatpush.bf16.msrb.mxu3 %v895_v58 }
  0x3c   :  { %502 = vmatpush.bf16.msrb.mxu1 %v895_v58 }
  0x3e   :  { %488 = vmatpush.bf16.msrb.mxu0 %v909_v1 }
  0x3f   :  { %455 = vmatpush.bf16.msrb.mxu2 %v902_v60  ;;  %471 = vmatpush.bf16.msrb.mxu3 %v902_v60 }
  0x40   :  { %503 = vmatpush.bf16.msrb.mxu1 %v902_v60 }
  0x42   :  { %489 = vmatpush.bf16.msrb.mxu0 %v914_v4 }
  0x43   :  { %456 = vmatpush.bf16.msrb.mxu2 %v909_v1  ;;  %472 = vmatpush.bf16.msrb.mxu3 %v909_v1 }
  0x44   :  { %504 = vmatpush.bf16.msrb.mxu1 %v909_v1 }
  0x47   :  { %457 = vmatpush.bf16.msrb.mxu2 %v914_v4  ;;  %473 = vmatpush.bf16.msrb.mxu3 %v914_v4 }
  0x48   :  { %505 = vmatpush.bf16.msrb.mxu1 %v914_v4 }
  0x4b   :  { %514 = vmatpush.bf16.msra.mxu2 %v875_v41 }
  0x4f   :  { %515 = vmatpush.bf16.msra.mxu2 %v880_v45 }
  0x53   :  { %516 = vmatpush.bf16.msra.mxu2 %v885_v49 }
  0x57   :  { %517 = vmatpush.bf16.msra.mxu2 %v890_v53 }
  0x5b   :  { %518 = vmatpush.bf16.msra.mxu2 %v895_v58 }
  0x5f   :  { %519 = vmatpush.bf16.msra.mxu2 %v902_v60 }
  0x63   :  { %520 = vmatpush.bf16.msra.mxu2 %v909_v1 }
  0x67   :  { %521 = vmatpush.bf16.msra.mxu2 %v914_v4 }
  0x6c   :  { %v133_v34 = vpop.permute.xlu2 %132 }
  0x6d   :  { %vm159_vm4 = vcmp.eq.s32.totalorder %v863_v19, %v133_v34 }
  0x6e   :  { %v618_v42 = vsel %vm159_vm4, 1.0, %v835_v22 }
  0x6f   :  { %v183_v47 = vpack.c.bf16 %v618_v42, %v618_v42 }
  0x71   :  { %v199_v51 = vunpack.c.l.b16 %v183_v47 }
  0x74   :  { %v140_v39 = vpop.permute.xlu2 %139 }
  0x75   :  { %vm160_vm5 = vcmp.eq.s32.totalorder %v863_v19, %v140_v39 }
  0x76   :  { %v619_v43 = vsel %vm160_vm5, 1.0, %v835_v22 }
  0x77   :  { %v184_v48 = vpack.c.bf16 %v619_v43, %v619_v43 }
  0x79   :  { %v200_v52 = vunpack.c.l.b16 %v184_v48 }
  0x7b   :  { %v205_v55 = vpack.c.b16 %v200_v52, %v199_v51 }
  0x83   :  { %v105_v20 = vpop.permute.xlu0 %104  ;;  %v119_v21 = vpop.permute.xlu1 %118 }
  0x84   :  { %vm155_vm0 = vcmp.eq.s32.totalorder %v863_v19, %v105_v20  ;;  %vm157_vm2 = vcmp.eq.s32.totalorder %v863_v19, %v119_v21 }
  0x85   :  { %v614_v23 = vsel %vm155_vm0, 1.0, %v835_v22  ;;  %v616_v32 = vsel %vm157_vm2, 1.0, %v835_v22 }
  0x86   :  { %v179_v25 = vpack.c.bf16 %v614_v23, %v614_v23  ;;  %v181_v35 = vpack.c.bf16 %v616_v32, %v616_v32 }
  0x88   :  { %v195_v28 = vunpack.c.l.b16 %v179_v25  ;;  %v197_v37 = vunpack.c.l.b16 %v181_v35 }
  0x8b   :  { %v112_v24 = vpop.permute.xlu0 %111  ;;  %v126_v30 = vpop.permute.xlu1 %125 }
  0x8c   :  { %vm156_vm1 = vcmp.eq.s32.totalorder %v863_v19, %v112_v24  ;;  %vm158_vm3 = vcmp.eq.s32.totalorder %v863_v19, %v126_v30  ;;  %v956_v24 = vld [vmem:[%s983_s2] sm:$0xff] }
  0x8d   :  { %v615_v26 = vsel %vm156_vm1, 1.0, %v835_v22  ;;  %v617_v33 = vsel %vm158_vm3, 1.0, %v835_v22  ;;  %v959_v25 = vperm.slane %v956_v24, 0 }
  0x8e   :  { %v180_v27 = vpack.c.bf16 %v615_v26, %v615_v26  ;;  %v182_v36 = vpack.c.bf16 %v617_v33, %v617_v33 }
  0x90   :  { %v196_v29 = vunpack.c.l.b16 %v180_v27  ;;  %v198_v38 = vunpack.c.l.b16 %v182_v36 }
  0x92   :  { %v203_v31 = vpack.c.b16 %v196_v29, %v195_v28  ;;  %v204_v40 = vpack.c.b16 %v198_v38, %v197_v37 }
  0x93   :  { %v154_v56 = vpop.permute.xlu1 %153  ;;  %v147_v57 = vpop.permute.xlu0 %146 }
  0x94   :  { %267 = vmatmul.bf16.vlgmr.msra.gmra.mxu0 %v203_v31  ;;  %vm162_vm6 = vcmp.eq.s32.totalorder %v863_v19, %v154_v56  ;;  %vm161_vm7 = vcmp.eq.s32.totalorder %v863_v19, %v147_v57 }
  0x95   :  { %v621_v61 = vsel %vm162_vm6, 1.0, %v835_v22  ;;  %v620_v62 = vsel %vm161_vm7, 1.0, %v835_v22 }
  0x96   :  { %v186_v63 = vpack.c.bf16 %v621_v61, %v621_v61  ;;  %v185_v0 = vpack.c.bf16 %v620_v62, %v620_v62 }
  0x98   :  { %v202_v2 = vunpack.c.l.b16 %v186_v63  ;;  %v201_v3 = vunpack.c.l.b16 %v185_v0 }
  0x9a   :  { %v206_v5 = vpack.c.b16 %v202_v2, %v201_v3 }
  0xa4   :  { %272 = vmatmul.bf16.gmra.mxu0 %v204_v40 }
  0xad   :  { %v427_v20 = vpop.f32.mrf.mxu2 }
  0xb4   :  { %277 = vmatmul.bf16.gmra.mxu0 %v205_v55 }
  0xb5   :  { %v429_v23 = vpop.f32.mrf.mxu2 }
  0xc4   :  { %282 = vmatmul.bf16.gmra.mxu0 %v206_v5  ;;  %v781_v5 = vld [vmem:[#allocation2 + $0xf8] sm:$0xff] }
  0xc5   :  { %595 = vmatpush.bf16.msra.mxu0 %v781_v5 }
  0xc9   :  { %596 = vmatpush.bf16.msra.mxu0 %v780_v6 }
  0xcd   :  { %597 = vmatpush.bf16.msra.mxu0 %v779_v7 }
  0xd1   :  { %598 = vmatpush.bf16.msra.mxu0 %v778_v8 }
  0xd5   :  { %599 = vmatpush.bf16.msra.mxu0 %v777_v9 }
 0x111   :  { %v268_v10 = vpop.f32.mrf.mxu0 }
 0x119   :  { %v270_v11 = vpop.f32.mrf.mxu0 }
 0x11a   :  { %v288_v12 = vpack.c.bf16 %v270_v11, %v268_v10 }
 0x11c   :  { %349 = vmatmul.bf16.vlgmr.msra.gmra.mxu1 %v288_v12 }
 0x121   :  { %v273_v13 = vpop.f32.mrf.mxu0 }
 0x129   :  { %v275_v14 = vpop.f32.mrf.mxu0 }
 0x12a   :  { %v289_v15 = vpack.c.bf16 %v275_v14, %v273_v13 }
 0x12c   :  { %354 = vmatmul.bf16.gmra.mxu1 %v289_v15  ;;  %v776_v15 = vld [vmem:[#allocation2 + $0xd0] sm:$0xff] }
 0x12d   :  { %600 = vmatpush.bf16.msra.mxu0 %v776_v15 }
 0x131   :  { %v278_v16 = vpop.f32.mrf.mxu0 }
 0x139   :  { %v280_v17 = vpop.f32.mrf.mxu0 }
 0x13a   :  { %v290_v18 = vpack.c.bf16 %v280_v17, %v278_v16  ;;  %v775_v16 = vld [vmem:[#allocation2 + $0xc8] sm:$0xff]  ;;  %v774_v17 = vld [vmem:[#allocation2 + $0xc0] sm:$0xff] }
 0x13b   :  { %601 = vmatpush.bf16.msra.mxu0 %v775_v16 }
 0x13c   :  { %359 = vmatmul.bf16.gmra.mxu1 %v290_v18 }
 0x13f   :  { %602 = vmatpush.bf16.msra.mxu0 %v774_v17 }
 0x141   :  { %v283_v19 = vpop.f32.mrf.mxu0 }
 0x149   :  { %v285_v21 = vpop.f32.mrf.mxu0 }
 0x14a   :  { %v291_v22 = vpack.c.bf16 %v285_v21, %v283_v19 }
 0x14c   :  { %364 = vmatmul.bf16.gmra.mxu1 %v291_v22 }
 0x199   :  { %v350_v26 = vpop.f32.mrf.mxu1 }
 0x19a   :  { %v351_v27 = vadd.f32 %v350_v26, %v959_v25  ;;  %v546_v26 = vperm.slane %v956_v24, 1 }
 0x19c   :  { %v431_v28 = vadd.f32 %v427_v20, %v351_v27 }
 0x19e   :  { %790 = vtanh.f32 %v431_v28 }
 0x1a1   :  { %v352_v29 = vpop.f32.mrf.mxu1 }
 0x1a2   :  { %v353_v38 = vadd.f32 %v352_v29, %v959_v25 }
 0x1a4   :  { %v791_v30 = vpop.eup %790 }
 0x1a5   :  { %v433_v31 = vpack.c.bf16 %v791_v30, %v791_v30 }
 0x1a7   :  { %442 = vmatmul.bf16.vlgmr.msra.gmra.mxu3 %v433_v31 }
 0x1a8   :  { %530 = vmatpush.bf16.msra.mxu3 %v875_v41 }
 0x1a9   :  { %v355_v32 = vpop.f32.mrf.mxu1 }
 0x1aa   :  { %v356_v44 = vadd.f32 %v355_v32, %v959_v25 }
 0x1ac   :  { %531 = vmatpush.bf16.msra.mxu3 %v880_v45 }
 0x1b0   :  { %532 = vmatpush.bf16.msra.mxu3 %v885_v49 }
 0x1b1   :  { %v357_v33 = vpop.f32.mrf.mxu1 }
 0x1b2   :  { %v358_v50 = vadd.f32 %v357_v33, %v959_v25 }
 0x1b4   :  { %533 = vmatpush.bf16.msra.mxu3 %v890_v53 }
 0x1b8   :  { %534 = vmatpush.bf16.msra.mxu3 %v895_v58 }
 0x1b9   :  { %v360_v34 = vpop.f32.mrf.mxu1 }
 0x1ba   :  { %v361_v56 = vadd.f32 %v360_v34, %v959_v25 }
 0x1bc   :  { %535 = vmatpush.bf16.msra.mxu3 %v902_v60 }
 0x1c0   :  { %536 = vmatpush.bf16.msra.mxu3 %v909_v1 }
 0x1c1   :  { %v362_v35 = vpop.f32.mrf.mxu1 }
 0x1c2   :  { %v363_v63 = vadd.f32 %v362_v35, %v959_v25 }
 0x1c4   :  { %537 = vmatpush.bf16.msra.mxu3 %v914_v4 }
 0x1c9   :  { %v365_v36 = vpop.f32.mrf.mxu1 }
 0x1ca   :  { %v366_v37 = vadd.f32 %v365_v36, %v959_v25 }
 0x1d1   :  { %v367_v62 = vpop.f32.mrf.mxu1 }
 0x1d2   :  { %v368_v18 = vadd.f32 %v367_v62, %v959_v25 }
 0x22a   :  { %v443_v39 = vpop.f32.mrf.mxu3 }
 0x22b   :  { %v447_v40 = vadd.f32 %v443_v39, %v353_v38 }
 0x22d   :  { %792 = vtanh.f32 %v447_v40 }
 0x232   :  { %v445_v41 = vpop.f32.mrf.mxu3 }
 0x233   :  { %v793_v42 = vpop.eup %792 }
 0x234   :  { %v449_v43 = vpack.c.bf16 %v793_v42, %v793_v42 }
 0x236   :  { %458 = vmatmul.bf16.vlgmr.msrb.gmra.mxu2 %v449_v43 }
 0x2b9   :  { %v459_v45 = vpop.f32.mrf.mxu2 }
 0x2ba   :  { %v463_v46 = vadd.f32 %v459_v45, %v356_v44 }
 0x2bc   :  { %794 = vtanh.f32 %v463_v46 }
 0x2c1   :  { %v461_v47 = vpop.f32.mrf.mxu2 }
 0x2c2   :  { %v795_v48 = vpop.eup %794 }
 0x2c3   :  { %v465_v49 = vpack.c.bf16 %v795_v48, %v795_v48 }
 0x2c5   :  { %474 = vmatmul.bf16.vlgmr.msrb.gmra.mxu3 %v465_v49 }
 0x348   :  { %v475_v51 = vpop.f32.mrf.mxu3 }
 0x349   :  { %v479_v52 = vadd.f32 %v475_v51, %v358_v50 }
 0x34b   :  { %796 = vtanh.f32 %v479_v52 }
 0x350   :  { %v477_v53 = vpop.f32.mrf.mxu3 }
 0x351   :  { %v797_v54 = vpop.eup %796 }
 0x352   :  { %v481_v55 = vpack.c.bf16 %v797_v54, %v797_v54 }
 0x354   :  { %490 = vmatmul.bf16.vlgmr.msrb.gmra.mxu0 %v481_v55 }
 0x3d1   :  { %v491_v57 = vpop.f32.mrf.mxu0 }
 0x3d2   :  { %v495_v58 = vadd.f32 %v491_v57, %v361_v56 }
 0x3d4   :  { %798 = vtanh.f32 %v495_v58 }
 0x3d9   :  { %v493_v59 = vpop.f32.mrf.mxu0 }
 0x3da   :  { %v799_v60 = vpop.eup %798 }
 0x3db   :  { %v497_v61 = vpack.c.bf16 %v799_v60, %v799_v60 }
 0x3dd   :  { %506 = vmatmul.bf16.vlgmr.msrb.gmra.mxu1 %v497_v61 }
 0x45a   :  { %v507_v0 = vpop.f32.mrf.mxu1 }
 0x45b   :  { %v511_v1 = vadd.f32 %v507_v0, %v363_v63 }
 0x45d   :  { %800 = vtanh.f32 %v511_v1 }
 0x462   :  { %v509_v2 = vpop.f32.mrf.mxu1 }
 0x463   :  { %v801_v3 = vpop.eup %800 }
 0x464   :  { %v513_v4 = vpack.c.bf16 %v801_v3, %v801_v3 }
 0x466   :  { %522 = vmatmul.bf16.vlgmr.msra.gmra.mxu2 %v513_v4 }
 0x4e9   :  { %v523_v10 = vpop.f32.mrf.mxu2 }
 0x4ea   :  { %v527_v11 = vadd.f32 %v523_v10, %v366_v37 }
 0x4ec   :  { %802 = vtanh.f32 %v527_v11 }
 0x4f1   :  { %v525_v12 = vpop.f32.mrf.mxu2 }
 0x4f2   :  { %v803_v13 = vpop.eup %802 }
 0x4f3   :  { %v529_v14 = vpack.c.bf16 %v803_v13, %v803_v13 }
 0x4f5   :  { %538 = vmatmul.bf16.vlgmr.msra.gmra.mxu3 %v529_v14 }
 0x578   :  { %v539_v19 = vpop.f32.mrf.mxu3 }
 0x579   :  { %v543_v20 = vadd.f32 %v539_v19, %v368_v18 }
 0x57b   :  { %804 = vtanh.f32 %v543_v20 }
 0x580   :  { %v541_v21 = vpop.f32.mrf.mxu3 }
 0x581   :  { %v805_v22 = vpop.eup %804 }
 0x582   :  { %v545_v23 = vpack.c.bf16 %v805_v22, %v805_v22 }
 0x584   :  { %603 = vmatmul.bf16.vlgmr.msra.gmra.mxu0 %v545_v23 }
 0x601   :  { %v604_v27 = vpop.f32.mrf.mxu0 }
 0x602   :  { %v605_v28 = vadd.f32 %v604_v27, %v546_v26 }
 0x604   :  { %608 = vst [vmem:[%s984_s3] sm:$0xff] %v605_v28 }
 0x609   :  { %v606_v29 = vpop.f32.mrf.mxu0 }
 0x60a   :  { %613 = vsyncpa [#allocation3], 1 }

</bundles_post_ra>
